<compile_context>
chip_gen: v6e
topology: v6e:2x2x1
jax: 0.10.0
libtpu: 0.0.40
codegen_flags: <defaults>
</compile_context>

<pallas_src>
import functools

import jax
import jax.numpy as jnp
from jax import lax
from jax.experimental import pallas as pl
from jax.experimental.pallas import tpu as pltpu

_MIB = 1024 * 1024
_CONTRACT_LAST = (((1,), (1,)), ((), ()))        # 'id,jd->ij' without transposing the RHS


def _round_up(x, m):
    return ((x + m - 1) // m) * m


def _device_profile():
    """TPU-generation-aware VMEM budget and routing thresholds."""
    kind = ""
    try:
        kind = jax.devices()[0].device_kind.lower()
    except Exception:
        pass
    old = ("v2" in kind) or ("v3" in kind)                  # tiny VMEM: don't raise limits
    big_vmem = ("v5" in kind) or ("v6" in kind)             # 128 MiB VMEM parts
    multicore = "v7" in kind                                # 2 TensorCores / chip
    if old:
        return {"vmem_limit": None, "ws_cap": 10 * _MIB, "mono_thresh": 256}
    if big_vmem:
        return {"vmem_limit": 96 * _MIB, "ws_cap": 72 * _MIB, "mono_thresh": 256}
    # v7x (64 MiB physical VMEM) and unknown parts: conservative.
    return {"vmem_limit": 48 * _MIB, "ws_cap": 36 * _MIB,
            "mono_thresh": 128 if multicore else 256}


def _compiler_params(profile, dims=None):
    kwargs = {}
    if dims is not None:
        kwargs["dimension_semantics"] = dims
    if profile["vmem_limit"] is not None:
        kwargs["vmem_limit_bytes"] = profile["vmem_limit"]
    return pltpu.CompilerParams(**kwargs)


def _exp_f32(logits_f32, exp_dtype):
    # Optional bf16 transcendental (~2x EUP throughput on v6e/v7x); the reductions
    # that consume the result always run in f32.
    return jnp.exp(logits_f32.astype(exp_dtype)).astype(jnp.float32)


# ----------------------------------------------------------------------------
# Path 1: monolithic kernel (small batches).
# ----------------------------------------------------------------------------
def _ntxent_kernel_small(o1_ref, o2_ref, loss_ref, *, inv_t, batch, exp_dtype, mxu_dtype):
    a = o1_ref[...]                              # [B, D]
    b = o2_ref[...]                              # [B, D]
    af = a.astype(jnp.float32)                   # f32 element products for pos/diag
    bf = b.astype(jnp.float32)

    a_s = a * inv_t                              # pre-scale one matmul operand by 1/T
    b_s = b * inv_t
    if mxu_dtype is not None:                    # opt-in single-pass bf16 MXU
        a_mm, b_mm = a.astype(mxu_dtype), b.astype(mxu_dtype)
        a_s_mm, b_s_mm = a_s.astype(mxu_dtype), b_s.astype(mxu_dtype)
    else:
        a_mm, b_mm, a_s_mm, b_s_mm = a, b, a_s, b_s

    def exp_dot(x, y):
        logits = lax.dot_general(x, y, _CONTRACT_LAST, preferred_element_type=jnp.float32)
        return _exp_f32(logits, exp_dtype)

    # Only 3 of the 4 BxB blocks of the virtual [2B, 2B] matrix are formed:
    # exp(b@a.T) == exp(a@b.T).T, so its row sums are the column sums of s_ab.
    s_aa = exp_dot(a_s_mm, a_mm)
    s_ab = exp_dot(a_s_mm, b_mm)
    s_bb = exp_dot(b_s_mm, b_mm)

    diag_a = jnp.exp(jnp.sum(af * af, axis=-1, keepdims=True) * inv_t)
    diag_b = jnp.exp(jnp.sum(bf * bf, axis=-1, keepdims=True) * inv_t)
    pos = jnp.sum(af * bf, axis=-1, keepdims=True) * inv_t

    denom_a = (jnp.sum(s_aa, axis=-1, keepdims=True)
               + jnp.sum(s_ab, axis=-1, keepdims=True) - diag_a)          # [B, 1]
    cross_b = jnp.transpose(jnp.sum(s_ab, axis=0, keepdims=True))         # [B, 1]
    denom_b = jnp.sum(s_bb, axis=-1, keepdims=True) + cross_b - diag_b    # [B, 1]

    total = (jnp.sum(jnp.log(denom_a)) + jnp.sum(jnp.log(denom_b))
             - 2.0 * jnp.sum(pos))
    loss_ref[0, 0] = total * (0.5 / batch)


def _ntxent_monolithic(out_1, out_2, inv_t, profile, exp_dtype, mxu_dtype):
    batch = out_1.shape[0]
    kernel = functools.partial(_ntxent_kernel_small, inv_t=inv_t, batch=batch,
                               exp_dtype=exp_dtype, mxu_dtype=mxu_dtype)
    loss = pl.pallas_call(
        kernel,
        out_shape=jax.ShapeDtypeStruct((1, 1), jnp.float32),
        in_specs=[pl.BlockSpec(memory_space=pltpu.MemorySpace.VMEM),
                  pl.BlockSpec(memory_space=pltpu.MemorySpace.VMEM)],
        out_specs=pl.BlockSpec(memory_space=pltpu.MemorySpace.SMEM),
        compiler_params=_compiler_params(profile),
    )(out_1, out_2)
    return loss[0, 0]


# ----------------------------------------------------------------------------
# Path 2: symmetric upper-triangular tile-pair kernel.
# ----------------------------------------------------------------------------
def _ntxent_pair_kernel(pair_i_ref, pair_k_ref, xrow_ref, xcol_ref,
                        rsum_ref, csum_ref, *, inv_t, exp_dtype, mxu_dtype):
    del pair_i_ref, pair_k_ref                   # only consumed by the index_maps
    x = xrow_ref[...]                            # [blk, D]  tile I of cat(out_1, out_2)
    y = xcol_ref[...]                            # [blk, D]  tile K
    x_s = x * inv_t                              # pre-scale one operand by 1/T (blk*D muls)
    if mxu_dtype is not None:                    # opt-in single-pass bf16 MXU
        x_s = x_s.astype(mxu_dtype)
        y = y.astype(mxu_dtype)
    logits = lax.dot_general(x_s, y, _CONTRACT_LAST, preferred_element_type=jnp.float32)
    s = _exp_f32(logits, exp_dtype)              # [blk, blk] exp-similarity tile (f32)
    # Row-sum partial -> denominators of block I (natural (blk, 1) layout).
    rsum_ref[...] = jnp.sum(s, axis=1, keepdims=True)
    # Column-sum partial == row sums of mirror tile S[K, I] -> block K (lane-dense).
    csum_ref[...] = jnp.sum(s, axis=0, keepdims=True)


def _ntxent_tiled(out_1, out_2, inv_t, blk, profile, exp_dtype, mxu_dtype):
    batch, dim = out_1.shape
    b_pad = _round_up(batch, blk)
    n_pad = b_pad - batch

    if n_pad:
        pad = jnp.zeros((n_pad, dim), dtype=out_1.dtype)
        o1p = jnp.concatenate([out_1, pad], axis=0)
        o2p = jnp.concatenate([out_2, pad], axis=0)
    else:
        o1p, o2p = out_1, out_2
    out = jnp.concatenate([o1p, o2p], axis=0)            # [2*b_pad, D]

    n_blocks = (2 * b_pad) // blk
    # Static upper-triangular tile-pair schedule.  The row block index changes
    # slowly, so Pallas elides its re-fetch between consecutive grid steps.
    pi, pk = [], []
    for i in range(n_blocks):
        for k in range(i, n_blocks):
            pi.append(i)
            pk.append(k)
    n_pairs = len(pi)
    pair_i = jnp.array(pi, dtype=jnp.int32)
    pair_k = jnp.array(pk, dtype=jnp.int32)
    offdiag = jnp.array([1.0 if a != b else 0.0 for a, b in zip(pi, pk)],
                        dtype=jnp.float32)

    kernel = functools.partial(_ntxent_pair_kernel, inv_t=inv_t,
                               exp_dtype=exp_dtype, mxu_dtype=mxu_dtype)
    row_spec = pl.BlockSpec((blk, dim), lambda p, pi_r, pk_r: (pi_r[p], 0))
    col_spec = pl.BlockSpec((blk, dim), lambda p, pi_r, pk_r: (pk_r[p], 0))
    rsum_parts, csum_parts = pl.pallas_call(
        kernel,
        out_shape=(jax.ShapeDtypeStruct((n_pairs * blk, 1), jnp.float32),
                   jax.ShapeDtypeStruct((n_pairs, blk), jnp.float32)),
        grid_spec=pltpu.PrefetchScalarGridSpec(
            num_scalar_prefetch=2,
            grid=(n_pairs,),
            in_specs=[row_spec, col_spec],
            out_specs=(pl.BlockSpec((blk, 1), lambda p, pi_r, pk_r: (p, 0)),
                       pl.BlockSpec((1, blk), lambda p, pi_r, pk_r: (p, 0))),
        ),
        compiler_params=_compiler_params(profile, dims=("parallel",)),
    )(pair_i, pair_k, out, out)

    # ---- tiny O(B*D + n_pairs*blk) combine in plain JAX ------------------------
    rsum_parts = rsum_parts.reshape(n_pairs, blk)
    csum_parts = csum_parts * offdiag[:, None]           # diagonal tiles counted once
    denom = jnp.zeros((n_blocks, blk), jnp.float32)
    denom = denom.at[pair_i].add(rsum_parts)
    denom = denom.at[pair_k].add(csum_parts)
    denom = denom.reshape(2 * b_pad)

    out_f32 = out.astype(jnp.float32)
    self_sim = jnp.exp(jnp.sum(out_f32 * out_f32, axis=-1) * inv_t)   # masked diagonal
    denom = denom - self_sim - 2.0 * n_pad               # exp(0)=1 per padded column (exact)

    log_d = jnp.log(denom)
    pos = jnp.sum(out_1.astype(jnp.float32) * out_2.astype(jnp.float32), axis=-1) * inv_t
    total = (jnp.sum(log_d[:batch]) + jnp.sum(log_d[b_pad:b_pad + batch])
             - 2.0 * jnp.sum(pos))
    return total / (2.0 * batch)


def _pick_block_size(batch, dim, itemsize, ws_cap):
    """Largest tile (<=1024) dividing the padded row count whose per-step
    working set (exp/logit temporaries + double-buffered input tiles) fits."""
    b_pad128 = _round_up(max(batch, 8), 128)
    for cand in (1024, 512, 256, 128):
        if b_pad128 % cand != 0:
            continue
        est = 12 * cand * cand + 4 * cand * dim * itemsize + (1 << 20)
        if est <= ws_cap:
            return cand
    return 128


# ----------------------------------------------------------------------------
# Public wrapper (== Loss.forward(out_1, out_2, batch_size, temperature)).
# ----------------------------------------------------------------------------
def ntxent_loss(out_1, out_2, batch_size=None, temperature=0.5, *,
                block_size=None, use_bf16_exp=False, use_bf16_matmul=False):
    """NT-Xent loss.

    use_bf16_exp    : run exp() on the EUP in bf16 (~2x the binding transcendental
                      slot on v6e/v7x; no gain on v5e).  Opt-in: ~0.1-0.5% loss shift.
    use_bf16_matmul : feed bf16 operands to the MXU for f32 inputs (single-pass MXU).
                      Opt-in for the same precision reason.
    NOTE: faithful to the PyTorch reference, no max-shift is applied before exp();
    inputs are expected to be L2-normalized.
    """
    assert out_1.shape == out_2.shape and out_1.ndim == 2
    batch, dim = out_1.shape
    if batch_size is not None:
        assert int(batch_size) == batch, "batch_size must match out_1.shape[0]"
    inv_t = 1.0 / float(temperature)
    profile = _device_profile()
    exp_dtype = jnp.bfloat16 if use_bf16_exp else jnp.float32
    mxu_dtype = jnp.bfloat16 if use_bf16_matmul else None
    itemsize = jnp.dtype(out_1.dtype).itemsize

    if block_size is not None:
        block_size = int(block_size)
        if block_size <= 0 or block_size % 8 != 0:
            block_size = None

    if block_size is None:
        mono_fits = (5 * batch * batch * 4 + 2 * batch * dim * itemsize + (1 << 20)
                     <= profile["ws_cap"])
        if batch <= profile["mono_thresh"] and mono_fits:
            return _ntxent_monolithic(out_1, out_2, inv_t, profile, exp_dtype, mxu_dtype)
        block_size = _pick_block_size(batch, dim, itemsize, profile["ws_cap"])

    return _ntxent_tiled(out_1, out_2, inv_t, block_size, profile, exp_dtype, mxu_dtype)


def _reference_loss(out_1, out_2, temperature=0.5):
    """Pure-JAX transcription of the PyTorch forward, for validation."""
    out = jnp.concatenate([out_1, out_2], axis=0)
    n = out.shape[0]
    sim = jnp.exp(out @ out.T / temperature)
    mask = 1.0 - jnp.eye(n, dtype=sim.dtype)
    denom = jnp.sum(sim * mask, axis=-1)
    pos = jnp.exp(jnp.sum(out_1 * out_2, axis=-1) / temperature)
    pos = jnp.concatenate([pos, pos], axis=0)
    return jnp.mean(-jnp.log(pos / denom))


if __name__ == "__main__":
    key = jax.random.PRNGKey(0)
    k1, k2, k3, k4, k5, k6 = jax.random.split(key, 6)

    def _norm(x):
        return x / jnp.linalg.norm(x, axis=-1, keepdims=True)

    # Case 1: tiny batch -> monolithic symmetry-exploiting kernel.
    o1 = _norm(jax.random.normal(k1, (4, 32), dtype=jnp.float32))
    o2 = _norm(jax.random.normal(k2, (4, 32), dtype=jnp.float32))
    loss1 = ntxent_loss(o1, o2, temperature=0.5)
    jax.block_until_ready(loss1)
    ref1 = _reference_loss(o1, o2, 0.5)
    assert jnp.allclose(loss1, ref1, rtol=1e-5, atol=1e-5), (loss1, ref1)

    # Case 2: aligned batch -> symmetric upper-triangular tile-pair kernel (10-pair grid).
    o1b = _norm(jax.random.normal(k3, (256, 128), dtype=jnp.float32))
    o2b = _norm(jax.random.normal(k4, (256, 128), dtype=jnp.float32))
    loss2 = ntxent_loss(o1b, o2b, temperature=0.5, block_size=128)
    jax.block_until_ready(loss2)
    ref2 = _reference_loss(o1b, o2b, 0.5)
    assert jnp.allclose(loss2, ref2, rtol=1e-4, atol=1e-4), (loss2, ref2)

    # Case 3: unaligned batch forced through the tiled path (zero-pad + exact
    # padded-column correction, padded rows dropped from the mean).
    o1c = _norm(jax.random.normal(k5, (100, 64), dtype=jnp.float32))
    o2c = _norm(jax.random.normal(k6, (100, 64), dtype=jnp.float32))
    loss3 = ntxent_loss(o1c, o2c, temperature=0.5, block_size=128)
    jax.block_until_ready(loss3)
    ref3 = _reference_loss(o1c, o2c, 0.5)
    assert jnp.allclose(loss3, ref3, rtol=1e-4, atol=1e-4), (loss3, ref3)

    # Case 4: opt-in fast path (bf16 exp + bf16 MXU), loose tolerance.
    loss4 = ntxent_loss(o1b, o2b, temperature=0.5, block_size=128,
                        use_bf16_exp=True, use_bf16_matmul=True)
    jax.block_until_ready(loss4)
    assert jnp.allclose(loss4, ref2, rtol=5e-2, atol=5e-2), (loss4, ref2)

    print("KERNEL_OK")
</pallas_src>

<mosaic_0001>
module attributes {stable_mosaic.version = 11 : i64} {
  func.func @_ntxent_kernel_small(%arg0: memref<4x32xf32, #tpu.memory_space<vmem>>, %arg1: memref<4x32xf32, #tpu.memory_space<vmem>>, %arg2: memref<1x1xf32, #tpu.memory_space<smem>>) attributes {dimension_semantics = [], scalar_prefetch = 0 : i64, scratch_operands = 0 : i64, tpu.core_type = #tpu.core_type<tc>} {
    %c0 = arith.constant 0 : index
    %c0_0 = arith.constant 0 : index
    %0 = vector.load %arg0[%c0, %c0_0] : memref<4x32xf32, #tpu.memory_space<vmem>>, vector<4x32xf32>
    %c0_1 = arith.constant 0 : index
    %c0_2 = arith.constant 0 : index
    %1 = vector.load %arg1[%c0_1, %c0_2] : memref<4x32xf32, #tpu.memory_space<vmem>>, vector<4x32xf32>
    %cst = arith.constant 2.000000e+00 : f32
    %2 = vector.broadcast %cst : f32 to vector<4x32xf32>
    %3 = arith.mulf %0, %2 : vector<4x32xf32>
    %cst_3 = arith.constant 2.000000e+00 : f32
    %4 = vector.broadcast %cst_3 : f32 to vector<4x32xf32>
    %5 = arith.mulf %1, %4 : vector<4x32xf32>
    %cst_4 = arith.constant dense<0.000000e+00> : vector<4x4xf32>
    %6 = tpu.matmul %3, %0, %cst_4 {dimension_numbers = #tpu.dot_dimension_numbers<[1], [1], [0], [0], [0, 0, 1, 0], [], []>} : vector<4x32xf32>, vector<4x32xf32>, vector<4x4xf32> -> vector<4x4xf32>
    %7 = math.exp %6 : vector<4x4xf32>
    %cst_5 = arith.constant dense<0.000000e+00> : vector<4x4xf32>
    %8 = tpu.matmul %3, %1, %cst_5 {dimension_numbers = #tpu.dot_dimension_numbers<[1], [1], [0], [0], [0, 0, 1, 0], [], []>} : vector<4x32xf32>, vector<4x32xf32>, vector<4x4xf32> -> vector<4x4xf32>
    %9 = math.exp %8 : vector<4x4xf32>
    %cst_6 = arith.constant dense<0.000000e+00> : vector<4x4xf32>
    %10 = tpu.matmul %5, %1, %cst_6 {dimension_numbers = #tpu.dot_dimension_numbers<[1], [1], [0], [0], [0, 0, 1, 0], [], []>} : vector<4x32xf32>, vector<4x32xf32>, vector<4x4xf32> -> vector<4x4xf32>
    %11 = math.exp %10 : vector<4x4xf32>
    %12 = arith.mulf %0, %0 : vector<4x32xf32>
    %cst_7 = arith.constant dense<0.000000e+00> : vector<4xf32>
    %13 = vector.multi_reduction <add>, %12, %cst_7 [1] : vector<4x32xf32> to vector<4xf32>
    %14 = vector.shape_cast %13 : vector<4xf32> to vector<4x1xf32>
    %cst_8 = arith.constant 2.000000e+00 : f32
    %15 = vector.broadcast %cst_8 : f32 to vector<4x1xf32>
    %16 = arith.mulf %14, %15 : vector<4x1xf32>
    %17 = math.exp %16 : vector<4x1xf32>
    %18 = arith.mulf %1, %1 : vector<4x32xf32>
    %cst_9 = arith.constant dense<0.000000e+00> : vector<4xf32>
    %19 = vector.multi_reduction <add>, %18, %cst_9 [1] : vector<4x32xf32> to vector<4xf32>
    %20 = vector.shape_cast %19 : vector<4xf32> to vector<4x1xf32>
    %cst_10 = arith.constant 2.000000e+00 : f32
    %21 = vector.broadcast %cst_10 : f32 to vector<4x1xf32>
    %22 = arith.mulf %20, %21 : vector<4x1xf32>
    %23 = math.exp %22 : vector<4x1xf32>
    %24 = arith.mulf %0, %1 : vector<4x32xf32>
    %cst_11 = arith.constant dense<0.000000e+00> : vector<4xf32>
    %25 = vector.multi_reduction <add>, %24, %cst_11 [1] : vector<4x32xf32> to vector<4xf32>
    %26 = vector.shape_cast %25 : vector<4xf32> to vector<4x1xf32>
    %cst_12 = arith.constant 2.000000e+00 : f32
    %27 = vector.broadcast %cst_12 : f32 to vector<4x1xf32>
    %28 = arith.mulf %26, %27 : vector<4x1xf32>
    %cst_13 = arith.constant dense<0.000000e+00> : vector<4xf32>
    %29 = vector.multi_reduction <add>, %7, %cst_13 [1] : vector<4x4xf32> to vector<4xf32>
    %30 = vector.shape_cast %29 : vector<4xf32> to vector<4x1xf32>
    %cst_14 = arith.constant dense<0.000000e+00> : vector<4xf32>
    %31 = vector.multi_reduction <add>, %9, %cst_14 [1] : vector<4x4xf32> to vector<4xf32>
    %32 = vector.shape_cast %31 : vector<4xf32> to vector<4x1xf32>
    %33 = arith.addf %30, %32 : vector<4x1xf32>
    %34 = arith.subf %33, %17 : vector<4x1xf32>
    %cst_15 = arith.constant dense<0.000000e+00> : vector<4xf32>
    %35 = vector.multi_reduction <add>, %9, %cst_15 [0] : vector<4x4xf32> to vector<4xf32>
    %36 = vector.shape_cast %35 : vector<4xf32> to vector<1x4xf32>
    %37 = tpu.transpose %36, [1, 0] : vector<1x4xf32> -> vector<4x1xf32>
    %cst_16 = arith.constant dense<0.000000e+00> : vector<4xf32>
    %38 = vector.multi_reduction <add>, %11, %cst_16 [1] : vector<4x4xf32> to vector<4xf32>
    %39 = vector.shape_cast %38 : vector<4xf32> to vector<4x1xf32>
    %40 = arith.addf %39, %37 : vector<4x1xf32>
    %41 = arith.subf %40, %23 : vector<4x1xf32>
    %42 = math.log %34 : vector<4x1xf32>
    %43 = vector.shape_cast %42 : vector<4x1xf32> to vector<1x4x1xf32>
    %cst_17 = arith.constant dense<0.000000e+00> : vector<1xf32>
    %44 = vector.multi_reduction <add>, %43, %cst_17 [1, 2] : vector<1x4x1xf32> to vector<1xf32>
    %45 = vector.shape_cast %44 : vector<1xf32> to vector<1x1x1xf32>
    %46 = vector.extract %45[0, 0, 0] : f32 from vector<1x1x1xf32>
    %47 = math.log %41 : vector<4x1xf32>
    %48 = vector.shape_cast %47 : vector<4x1xf32> to vector<1x4x1xf32>
    %cst_18 = arith.constant dense<0.000000e+00> : vector<1xf32>
    %49 = vector.multi_reduction <add>, %48, %cst_18 [1, 2] : vector<1x4x1xf32> to vector<1xf32>
    %50 = vector.shape_cast %49 : vector<1xf32> to vector<1x1x1xf32>
    %51 = vector.extract %50[0, 0, 0] : f32 from vector<1x1x1xf32>
    %52 = arith.addf %46, %51 : f32
    %53 = vector.shape_cast %28 : vector<4x1xf32> to vector<1x4x1xf32>
    %cst_19 = arith.constant dense<0.000000e+00> : vector<1xf32>
    %54 = vector.multi_reduction <add>, %53, %cst_19 [1, 2] : vector<1x4x1xf32> to vector<1xf32>
    %55 = vector.shape_cast %54 : vector<1xf32> to vector<1x1x1xf32>
    %56 = vector.extract %55[0, 0, 0] : f32 from vector<1x1x1xf32>
    %cst_20 = arith.constant 2.000000e+00 : f32
    %57 = arith.mulf %cst_20, %56 : f32
    %58 = arith.subf %52, %57 : f32
    %cst_21 = arith.constant 1.250000e-01 : f32
    %59 = arith.mulf %58, %cst_21 : f32
    %c0_22 = arith.constant 0 : index
    %c0_23 = arith.constant 0 : index
    %60 = memref.load %arg2[%c0_22, %c0_23] : memref<1x1xf32, #tpu.memory_space<smem>>
    memref.store %59, %arg2[%c0_22, %c0_23] : memref<1x1xf32, #tpu.memory_space<smem>>
    return
  }
}

</mosaic_0001>

<bundles_post_ra>
// kernel: tpu_custom_call.1
= control target key start
LH: loop header
LB: loop body
LE: loop exit
PB: predicated region body
PF: predicated region fallthrough
CT: control target
= control target key end

     0   :  { %7 = vsyncpa [#allocation3], 0  ;;  %s538_s0 = inlined_call_operand.hbm [shape: f32[4,32], index: 0, kind: input, shape index: {}]   ;;  %s539_s1 = inlined_call_operand.hbm [shape: f32[4,32], index: 1, kind: input, shape index: {}]   ;;  %s540_s2 = inlined_call_operand.hbm [shape: f32[1,1], index: 2, kind: output, shape index: {}]  }
   0x1   :  { %8 = vsyncpa [#allocation6], 0 }
   0x2   :  { %9 = vsyncpa [#allocation4], 0  ;;  %s503_s9 = smov [#allocation2]   ;;  %s504_s11 = smov [#allocation5]  }
   0x3   :  { %s16_s10 = sshll.u32 %s503_s9, 4  ;;  %s26_s12 = sshll.u32 %s504_s11, 4  ;;  %s17_s10 = int_to_ptr.vmem [resolvable:$true] %s16_s10  ;;  %s27_s12 = int_to_ptr.vmem [resolvable:$true] %s26_s12 }
   0x4   :  { %s457_s13 = scalar_lea.vmem %s17_s10, 64  ;;  %p462_p1 = scmp.lt.s32.totalorder %s17_s10, %s17_s10 }
   0x5   :  { %p458_p0 = scmp.ne.s32.totalorder %s17_s10, %s457_s13  ;;  %p463_p2 = scmp.lt.s32.totalorder %s457_s13, %s457_s13 }
   0x7   :  { %p464_p3 = por %p463_p2, %p462_p1 }
   0x9   :  { %p465_p4 = pnand %p464_p3, %p458_p0 }
   0xb   :  { %468 = shalt.err (!%p465_p4)
}
   0xc   :  { %19 = dma.hbm_to_vmem [thread:$0]  %s538_s0, 64, %s17_s10, [#allocation3]  }
   0xd   :  { %s477_s16 = scalar_lea.vmem %s27_s12, 64  ;;  %p482_p6 = scmp.lt.s32.totalorder %s27_s12, %s27_s12 }
   0xe   :  { %p478_p5 = scmp.ne.s32.totalorder %s27_s12, %s477_s16  ;;  %p483_p7 = scmp.lt.s32.totalorder %s477_s16, %s477_s16 }
  0x10   :  { %p484_p8 = por %p483_p7, %p482_p6 }
  0x12   :  { %p485_p9 = pnand %p484_p8, %p478_p5 }
  0x14   :  { %488 = shalt.err (!%p485_p9)
}
  0x15   :  { %29 = dma.hbm_to_vmem [thread:$0]  %s539_s1, 64, %s27_s12, [#allocation6]  }
  0x16   :  { %497 = dma.done.wait [#allocation3], 64  }
  0x17   :  { %498 = vsyncadd [#allocation3], 4294967232 }
  0x18   :  { %499 = dma.done.wait [#allocation6], 64  }
  0x19   :  { %500 = vsyncadd [#allocation6], 4294967232  ;;  %v505_v0 = vmov 0.0   ;;  %vm506_vm0 = vmmov 0   ;;  %vm40_vm1 = vcmask 261120   ;;  %vm270_vm2 = vcmask 257024  }
  0x1a   :  { %409 = vmatprep.subr.mxu0 %v505_v0  ;;  %411 = vmatprep.mubr.msk.f32.mxu0 %vm506_vm0, %v505_v0  ;;  %v36_v1 = vld [vmem:[#allocation2] sm:$0xf]  ;;  %v37_v2 = vld [vmem:[#allocation5] sm:$0xf]  ;;  %vm289_vm3 = vcmask 27648   ;;  %vm343_vm4 = vcmask 3072  }
  0x1b   :  { %414 = vmatprep.subr.mxu1 %v505_v0  ;;  %416 = vmatprep.mubr.msk.f32.mxu1 %vm506_vm0, %v505_v0  ;;  %v38_v3 = vmul.f32 2.0, %v36_v1  ;;  %v39_v4 = vmul.f32 2.0, %v37_v2  ;;  %v269_v5 = vmul.f32 %v36_v1, %v36_v1  ;;  %v277_v7 = vmul.f32 %v37_v2, %v37_v2  ;;  %s507_s24 = smov [#allocation7]  }
  0x1c   :  { %410 = vmatpush3.xpose.msk.msra.mxu0 %vm40_vm1, %v36_v1  ;;  %415 = vmatpush3.xpose.msk.msra.mxu1 %vm40_vm1, %v37_v2  ;;  %v284_v22 = vmul.f32 %v37_v2, %v36_v1 }
  0x1d   :  { %419 = vmatprep.subr.mxu0 %v505_v0  ;;  %v271_v6 = vsel %vm270_vm2, %v269_v5, 0.0  ;;  %v278_v8 = vsel %vm270_vm2, %v277_v7, 0.0 }
  0x1e   :  { %272 = vadd.xlane.f32.xlu0 %v271_v6  ;;  %v285_v25 = vsel %vm270_vm2, %v284_v22, 0.0 }
  0x1f   :  { %412 = vmatmul.mubr.msk.f32.vlgmr.msra.gmra.mxu0 %vm40_vm1, %v38_v3  ;;  %417 = vmatmul.mubr.msk.f32.vlgmr.msra.gmra.mxu1 %vm40_vm1, %v38_v3 }
  0x20   :  { %420 = vmatpush3.xpose.msk.msra.mxu0 %vm40_vm1, %v37_v2  ;;  %421 = vmatprep.mubr.msk.f32.mxu0 %vm506_vm0, %v505_v0 }
  0x22   :  { %279 = vadd.xlane.f32.xlu0 %v278_v8 }
  0x23   :  { %422 = vmatmul.mubr.msk.f32.vlgmr.msra.gmra.mxu0 %vm40_vm1, %v39_v4 }
  0xa7   :  { %v273_v32 = vpop.xlane.xlu0 %272 }
  0xa8   :  { %v274_v33 = vmul.f32 2.0, %v273_v32 }
  0xaa   :  { %v275_v34 = vmul.f32 1.442695, %v274_v33 }
  0xab   :  { %v280_v40 = vpop.xlane.xlu0 %279 }
  0xac   :  { %v281_v41 = vmul.f32 2.0, %v280_v40 }
  0xae   :  { %v282_v42 = vmul.f32 1.442695, %v281_v41 }
  0xdf   :  { %v113_v9 = vpop.f32.mrf.mxu0  ;;  %v188_v10 = vpop.f32.mrf.mxu1 }
  0xe0   :  { %v117_v11 = vmul.f32 1.442695, %v113_v9  ;;  %v192_v12 = vmul.f32 1.442695, %v188_v10 }
  0xe1   :  { %v413_v13 = vpop.f32.mrf.mxu0  ;;  %v418_v14 = vpop.f32.mrf.mxu1 }
  0xe2   :  { %435 = vpow2.f32 %v117_v11 }
  0xe3   :  { %437 = vpow2.f32 %v192_v12  ;;  %v263_v15 = vpop.f32.mrf.mxu0 }
  0xe4   :  { %v267_v16 = vmul.f32 1.442695, %v263_v15 }
  0xe5   :  { %v423_v17 = vpop.f32.mrf.mxu0 }
  0xe6   :  { %439 = vpow2.f32 %v267_v16 }
  0xe7   :  { %441 = vpow2.f32 %v275_v34 }
  0xef   :  { %v436_v18 = vpop.eup %435 }
  0xf0   :  { %v438_v19 = vpop.eup %437  ;;  %v290_v20 = vsel %vm289_vm3, %v436_v18, 0.0 }
  0xf1   :  { %291 = vadd.xlane.f32.xlu1 %v290_v20  ;;  %v293_v21 = vsel %vm289_vm3, %v438_v19, 0.0 }
  0xf2   :  { %v298_v26 = vrot.slane %v293_v21, 4 }
  0xf3   :  { %v440_v23 = vpop.eup %439 }
  0xf4   :  { %v336_v24 = vsel %vm289_vm3, %v440_v23, 0.0  ;;  %v299_v27 = vadd.f32 %v298_v26, %v293_v21  ;;  %v442_v36 = vpop.eup %441 }
  0xf5   :  { %294 = vadd.xlane.f32.xlu1 %v293_v21  ;;  %337 = vadd.xlane.f32.xlu0 %v336_v24 }
  0xf6   :  { %v300_v28 = vrot.slane %v299_v27, 2 }
  0xf8   :  { %v301_v29 = vadd.f32 %v300_v28, %v299_v27 }
  0xf9   :  { %286 = vadd.xlane.f32.xlu1 %v285_v25 }
  0xfa   :  { %v302_v30 = vrot.slane %v301_v29, 1 }
  0xfc   :  { %v303_v31 = vadd.f32 %v302_v30, %v301_v29 }
 0x122   :  { %304 = vxpose.xlu0.b32.start.end [1/1] (short) (narrow) %v303_v31, 8 }
 0x17a   :  { %v292_v35 = vpop.xlane.xlu1 %291 }
 0x17e   :  { %v295_v37 = vpop.xlane.xlu1 %294  ;;  %v338_v46 = vpop.xlane.xlu0 %337 }
 0x17f   :  { %v296_v38 = vadd.f32 %v295_v37, %v292_v35 }
 0x181   :  { %v297_v39 = vsub.f32 %v296_v38, %v442_v36 }
 0x182   :  { %v287_v51 = vpop.xlane.xlu1 %286 }
 0x183   :  { %443 = vlog2.f32 %v297_v39  ;;  %v288_v53 = vmul.f32 2.0, %v287_v51 }
 0x184   :  { %445 = vpow2.f32 %v282_v42 }
 0x185   :  { %v367_v56 = vsel %vm343_vm4, %v288_v53, 0.0 }
 0x190   :  { %v444_v43 = vpop.eup %443 }
 0x191   :  { %v342_v44 = vmul.f32 0.6931472, %v444_v43  ;;  %v446_v49 = vpop.eup %445 }
 0x193   :  { %v344_v45 = vsel %vm343_vm4, %v342_v44, 0.0 }
 0x194   :  { %345 = vadd.xlane.f32.xlu1 %v344_v45 }
 0x19e   :  { %v320_v47 = vpop.trf.xlu0 }
 0x19f   :  { %v339_v48 = vadd.f32 %v338_v46, %v320_v47 }
 0x1a1   :  { %v340_v50 = vsub.f32 %v339_v48, %v446_v49 }
 0x1a3   :  { %447 = vlog2.f32 %v340_v50 }
 0x1b0   :  { %v448_v52 = vpop.eup %447 }
 0x1b1   :  { %v355_v54 = vmul.f32 0.6931472, %v448_v52 }
 0x1b3   :  { %v356_v55 = vsel %vm343_vm4, %v355_v54, 0.0 }
 0x1b4   :  { %357 = vadd.xlane.f32.xlu1 %v356_v55 }
 0x1b8   :  { %368 = vadd.xlane.f32.xlu1 %v367_v56 }
 0x21d   :  { %v346_v57 = vpop.xlane.xlu1 %345 }
 0x21e   :  { %v347_v58 = vrot.slane %v346_v57, 4 }
 0x220   :  { %v348_v59 = vadd.f32 %v347_v58, %v346_v57 }
 0x222   :  { %v349_v60 = vrot.slane %v348_v59, 2 }
 0x224   :  { %v350_v61 = vadd.f32 %v349_v60, %v348_v59 }
 0x226   :  { %v351_v62 = vrot.slane %v350_v61, 1 }
 0x228   :  { %v352_v63 = vadd.f32 %v351_v62, %v350_v61 }
 0x22a   :  { %424 = vpush %v352_v63 }
 0x23d   :  { %v358_v0 = vpop.xlane.xlu1 %357 }
 0x23e   :  { %v359_v1 = vrot.slane %v358_v0, 4 }
 0x240   :  { %v360_v2 = vadd.f32 %v359_v1, %v358_v0 }
 0x241   :  { %v369_v3 = vpop.xlane.xlu1 %368 }
 0x242   :  { %v361_v4 = vrot.slane %v360_v2, 2  ;;  %v370_v5 = vrot.slane %v369_v3, 4 }
 0x244   :  { %v371_v6 = vadd.f32 %v370_v5, %v369_v3  ;;  %v362_v7 = vadd.f32 %v361_v4, %v360_v2 }
 0x246   :  { %v372_v8 = vrot.slane %v371_v6, 2  ;;  %v363_v9 = vrot.slane %v362_v7, 1 }
 0x248   :  { %v373_v10 = vadd.f32 %v372_v8, %v371_v6  ;;  %v364_v11 = vadd.f32 %v363_v9, %v362_v7 }
 0x24a   :  { %426 = vpush %v364_v11  ;;  %v374_v12 = vrot.slane %v373_v10, 1 }
 0x24c   :  { %v375_v13 = vadd.f32 %v374_v12, %v373_v10 }
 0x24e   :  { %428 = vpush %v375_v13 }
 0x25b   :  { %s425_s0 = spop %424 }
 0x27b   :  { %s427_s1 = spop %426 }
 0x27c   :  { %s366_s20 = sadd.f32 %s427_s1, %s425_s0 }
 0x27f   :  { %s429_s19 = spop %428 }
 0x280   :  { %s377_s21 = smul.f32 2.0, %s429_s19 }
 0x282   :  { %s378_s22 = ssub.f32 %s366_s20, %s377_s21 }
 0x284   :  { %s379_s23 = smul.f32 0.125, %s378_s22 }
 0x286   :  { %381 = sst [smem:[#allocation7]] %s379_s23 }
 0x287   :  { %389 = dma.smem_to_hbm %s507_s24, 16, %s540_s2, [#allocation4]  }
 0x288   :  { %501 = dma.done.wait [#allocation4], 16  }
 0x289   :  { %502 = vsyncadd [#allocation4], 4294967280 }
 0x28a   :  { %393 = sfence }
 0x28b   :  { %394 = vsyncpa [#allocation3], 1 }
 0x28c   :  { %395 = vsyncpa [#allocation6], 1 }
 0x28d   :  { %396 = vsyncpa [#allocation4], 1 }

</bundles_post_ra>
